<compile_context>
chip_gen: v5e
topology: v5e:2x2
jax: 0.10.0
libtpu: 0.0.40
codegen_flags: <defaults>
</compile_context>

<pallas_src>
import jax
import jax.numpy as jnp
from jax.experimental import pallas as pl
from jax.experimental.pallas import tpu as pltpu

HP1 = 128  # padded hidden-1 width (lane-dense MXU N)
HP2 = 128  # padded hidden-2 width (lane-dense MXU N)


def _round_up(x, m):
    return ((x + m - 1) // m) * m


def _num_tensorcores():
    """2 TensorCores per chip on v7x, 1 on v5e/v6e (heuristic, safe fallback)."""
    try:
        kind = jax.devices()[0].device_kind.lower().replace(" ", "")
    except Exception:
        return 1
    return 2 if ("v7" in kind or "tpu7" in kind) else 1


def critic_kernel(s_ref, a_ref, w1_ref, w2_ref, consts_ref, o_ref):
    # Packed constants: row 0 = b1, row 1 = b2, row 2 = w3 (as a row), row 3 = b3.
    b1 = consts_ref[0:1, :]
    b2 = consts_ref[1:2, :]
    w3 = consts_ref[2:3, :]
    b3 = consts_ref[3:4, 0:1]

    # Layer 1 (MXU, bf16 operands, f32 accumulate): h1 = relu(states @ W1p + b1p).
    h1 = jnp.dot(s_ref[...].astype(jnp.bfloat16), w1_ref[...],
                 preferred_element_type=jnp.float32)
    h1 = jnp.maximum(h1 + b1, 0.0)

    # Layer 2: relu(concat([h1, actions]) @ W2full + b2) as ONE MXU pass.
    # Concat offset is 128 lanes (tile-aligned) so no relayout; K = 128 + A
    # still fits a single MXU K pass -> same push count as K = 128, and the
    # standalone (B, A) @ (A, 128) action matmul + its drain chain disappear.
    x = jnp.concatenate(
        [h1.astype(jnp.bfloat16), a_ref[...].astype(jnp.bfloat16)], axis=-1)
    h2 = jnp.dot(x, w2_ref[...], preferred_element_type=jnp.float32)
    h2 = jnp.maximum(h2 + b2, 0.0)

    # Output layer is an (L2 -> 1) matvec: keep it off the MXU.  VPU multiply
    # + XLU lane reduction; padded lanes of h2 are exactly zero.
    o = jnp.sum(h2 * w3, axis=-1, keepdims=True) + b3
    o_ref[...] = o.astype(o_ref.dtype)


def critic_forward(states, actions, params, *, block_b=2048):
    """Pallas wrapper.  Grid over batch tiles; weights stay VMEM-resident."""
    B, I = states.shape
    A = actions.shape[1]
    w1p, w2p, consts = params
    hp1 = w1p.shape[1]
    hp2 = w2p.shape[1]
    assert w2p.shape[0] == hp1 + A

    # Batch tile:
    #  * single-TC chips (v5e/v6e): whole batch in one step when it fits
    #    (per-step pipeline overhead dominates this tiny kernel),
    #  * v7x (2 TCs): split into >= 2 "parallel" steps so both cores work,
    #  * capped at block_b rows/step (well inside 32 MiB of scoped VMEM).
    ntc = _num_tensorcores()
    if ntc > 1 and B > 16:
        tm = min(_round_up(pl.cdiv(B, ntc), 8), block_b)
    else:
        tm = min(B, block_b)
    tm = max(tm, 1)
    grid = (pl.cdiv(B, tm),)

    def const(shape):
        # Constant block index -> fetched once, stays VMEM-resident across steps.
        return pl.BlockSpec(shape, lambda i: (0, 0))

    flops = 2 * B * (I * hp1 + (hp1 + A) * hp2 + hp2)
    bytes_accessed = (states.size * states.dtype.itemsize
                      + actions.size * actions.dtype.itemsize
                      + B * 4
                      + w1p.size * w1p.dtype.itemsize
                      + w2p.size * w2p.dtype.itemsize
                      + consts.size * consts.dtype.itemsize)

    return pl.pallas_call(
        critic_kernel,
        out_shape=jax.ShapeDtypeStruct((B, 1), jnp.float32),
        grid=grid,
        in_specs=[
            pl.BlockSpec((tm, I), lambda i: (i, 0)),   # states (batch-tiled)
            pl.BlockSpec((tm, A), lambda i: (i, 0)),   # actions (batch-tiled)
            const((I, hp1)),                           # W1 (padded, bf16)
            const((hp1 + A, hp2)),                     # full W2 (state+action rows, bf16)
            const((8, hp1)),                           # packed b1/b2/w3/b3 (f32)
        ],
        out_specs=pl.BlockSpec((tm, 1), lambda i: (i, 0)),
        compiler_params=pltpu.CompilerParams(
            dimension_semantics=("parallel",),
            vmem_limit_bytes=32 * 1024 * 1024),
        cost_estimate=pl.CostEstimate(
            flops=flops, transcendentals=0, bytes_accessed=bytes_accessed),
    )(states, actions, w1p, w2p, consts)


def init_raw_params(key, i_shape, l1_shape, action_shape, l2_shape):
    """Deterministic synthetic parameters (PyTorch nn.Linear-like uniform),
    stored as (in, out) so forward does x @ W."""
    ks = jax.random.split(key, 6)

    def lin(kw, kb, fan_in, fan_out):
        bound = 1.0 / (fan_in ** 0.5)
        w = jax.random.uniform(kw, (fan_in, fan_out), jnp.float32, -bound, bound)
        b = jax.random.uniform(kb, (1, fan_out), jnp.float32, -bound, bound)
        return w, b

    w1, b1 = lin(ks[0], ks[1], i_shape, l1_shape)
    w2, b2 = lin(ks[2], ks[3], l1_shape + action_shape, l2_shape)
    w3, b3 = lin(ks[4], ks[5], l2_shape, 1)
    return (w1, b1, w2, b2, w3, b3)


def pack_params(raw, i_shape, l1_shape, action_shape, l2_shape,
                hp1=HP1, hp2=HP2):
    """One-time pack: zero-pad hidden dims to lane-dense widths, place W2's
    state rows at 0:l1 and its action rows at hp1:hp1+A (so the kernel's
    tile-aligned concat([h1, actions]) multiplies against one matrix), merge
    the four small constants into a single (8, hp1) tile, cast MXU weights
    to bf16.  Zero-padded rows/cols contribute nothing -> semantics exact."""
    assert hp1 == hp2, "constant packing assumes equal padded hidden widths"
    w1, b1, w2, b2, w3, b3 = raw
    w2s, w2a = w2[:l1_shape, :], w2[l1_shape:, :]

    w1p = jnp.zeros((i_shape, hp1), jnp.float32).at[:, :l1_shape].set(w1)

    w2p = jnp.zeros((hp1 + action_shape, hp2), jnp.float32)
    w2p = w2p.at[:l1_shape, :l2_shape].set(w2s)
    w2p = w2p.at[hp1:hp1 + action_shape, :l2_shape].set(w2a)

    consts = jnp.zeros((8, hp1), jnp.float32)
    consts = consts.at[0, :l1_shape].set(b1[0])
    consts = consts.at[1, :l2_shape].set(b2[0])
    consts = consts.at[2, :l2_shape].set(w3[:, 0])
    consts = consts.at[3, :].set(b3[0, 0])

    return (w1p.astype(jnp.bfloat16), w2p.astype(jnp.bfloat16), consts)


def reference_f32(states, actions, raw):
    """Faithful f32 PyTorch-equivalent forward (semantic reference)."""
    w1, b1, w2, b2, w3, b3 = raw
    h1 = jax.nn.relu(states @ w1 + b1)
    x = jnp.concatenate([h1, actions], axis=1)
    h2 = jax.nn.relu(x @ w2 + b2)
    return h2 @ w3 + b3


def reference_bf16(states, actions, packed):
    """Same math as the kernel (bf16 MXU operands, f32 accumulate)."""
    w1p, w2p, consts = packed
    b1 = consts[0:1, :]
    b2 = consts[1:2, :]
    w3 = consts[2:3, :]
    b3 = consts[3, 0]
    h1 = jax.nn.relu(jnp.dot(states.astype(jnp.bfloat16), w1p,
                             preferred_element_type=jnp.float32) + b1)
    x = jnp.concatenate([h1.astype(jnp.bfloat16),
                         actions.astype(jnp.bfloat16)], axis=-1)
    h2 = jax.nn.relu(jnp.dot(x, w2p, preferred_element_type=jnp.float32) + b2)
    return jnp.sum(h2 * w3, axis=-1, keepdims=True) + b3


if __name__ == "__main__":
    # Shapes consistent with the module's init dict:
    #   i_shape=32, l1_shape=64, action_shape=8, l2_shape=64, batch=8
    I, L1, A, L2 = 32, 64, 8, 64

    key = jax.random.PRNGKey(0)
    k_s, k_a, k_p, k_s2, k_a2 = jax.random.split(key, 5)

    raw = init_raw_params(k_p, I, L1, A, L2)
    packed = pack_params(raw, I, L1, A, L2)

    # --- small demo (single grid step) ---
    B = 8
    states = jax.random.normal(k_s, (B, I), jnp.float32)
    actions = jax.random.normal(k_a, (B, A), jnp.float32)
    out = jax.block_until_ready(critic_forward(states, actions, packed))
    assert out.shape == (B, 1)
    assert jnp.allclose(out, reference_bf16(states, actions, packed),
                        atol=2e-3, rtol=2e-3), "mismatch vs bf16-matched ref"
    assert jnp.allclose(out, reference_f32(states, actions, raw),
                        atol=5e-2, rtol=5e-2), "mismatch vs f32 reference"

    # --- batched path (whole batch in one step on v5e/v6e, 2 steps on v7x) ---
    B2 = 1024
    states2 = jax.random.normal(k_s2, (B2, I), jnp.float32)
    actions2 = jax.random.normal(k_a2, (B2, A), jnp.float32)
    out2 = jax.block_until_ready(critic_forward(states2, actions2, packed))
    assert out2.shape == (B2, 1)
    assert jnp.allclose(out2, reference_bf16(states2, actions2, packed),
                        atol=2e-3, rtol=2e-3), "mismatch vs bf16-matched ref (batched)"

    print("KERNEL_OK")
</pallas_src>

<mosaic_0001>
module attributes {stable_mosaic.version = 11 : i64} {
  func.func @critic_kernel(%arg0: i32, %arg1: memref<8x32xf32, #tpu.memory_space<vmem>>, %arg2: memref<8x8xf32, #tpu.memory_space<vmem>>, %arg3: memref<32x128xbf16, #tpu.memory_space<vmem>>, %arg4: memref<136x128xbf16, #tpu.memory_space<vmem>>, %arg5: memref<8x128xf32, #tpu.memory_space<vmem>>, %arg6: memref<8x1xf32, #tpu.memory_space<vmem>>) attributes {dimension_semantics = [#tpu.dimension_semantics<parallel>], iteration_bounds = array<i64: 1>, scalar_prefetch = 0 : i64, scratch_operands = 0 : i64, tpu.core_type = #tpu.core_type<tc>, window_params = [{transform_indices = @transform_0, window_bounds = array<i64: 8, 32>}, {transform_indices = @transform_1, window_bounds = array<i64: 8, 8>}, {pipeline_mode = #tpu.pipeline_mode<synchronous>, transform_indices = @transform_2, window_bounds = array<i64: 32, 128>}, {pipeline_mode = #tpu.pipeline_mode<synchronous>, transform_indices = @transform_3, window_bounds = array<i64: 136, 128>}, {pipeline_mode = #tpu.pipeline_mode<synchronous>, transform_indices = @transform_4, window_bounds = array<i64: 8, 128>}, {transform_indices = @transform_5, window_bounds = array<i64: 8, 1>}]} {
    %c0 = arith.constant 0 : index
    %c0_0 = arith.constant 0 : index
    %0 = vector.load %arg5[%c0, %c0_0] : memref<8x128xf32, #tpu.memory_space<vmem>>, vector<1x128xf32>
    %c1 = arith.constant 1 : index
    %c0_1 = arith.constant 0 : index
    %1 = vector.load %arg5[%c1, %c0_1] : memref<8x128xf32, #tpu.memory_space<vmem>>, vector<1x128xf32>
    %c2 = arith.constant 2 : index
    %c0_2 = arith.constant 0 : index
    %2 = vector.load %arg5[%c2, %c0_2] : memref<8x128xf32, #tpu.memory_space<vmem>>, vector<1x128xf32>
    %c3 = arith.constant 3 : index
    %c0_3 = arith.constant 0 : index
    %3 = vector.load %arg5[%c3, %c0_3] : memref<8x128xf32, #tpu.memory_space<vmem>>, vector<1x1xf32>
    %c0_4 = arith.constant 0 : index
    %c0_5 = arith.constant 0 : index
    %4 = vector.load %arg1[%c0_4, %c0_5] : memref<8x32xf32, #tpu.memory_space<vmem>>, vector<8x32xf32>
    %5 = arith.truncf %4 : vector<8x32xf32> to vector<8x32xbf16>
    %c0_6 = arith.constant 0 : index
    %c0_7 = arith.constant 0 : index
    %6 = vector.load %arg3[%c0_6, %c0_7] : memref<32x128xbf16, #tpu.memory_space<vmem>>, vector<32x128xbf16>
    %cst = arith.constant dense<0.000000e+00> : vector<8x128xf32>
    %7 = tpu.matmul %5, %6, %cst {dimension_numbers = #tpu.dot_dimension_numbers<[1], [0], [0], [1], [0, 0, 1, 1], [], []>} : vector<8x32xbf16>, vector<32x128xbf16>, vector<8x128xf32> -> vector<8x128xf32>
    %8 = vector.broadcast %0 : vector<1x128xf32> to vector<8x128xf32>
    %9 = arith.addf %7, %8 : vector<8x128xf32>
    %cst_8 = arith.constant 0.000000e+00 : f32
    %10 = vector.broadcast %cst_8 : f32 to vector<8x128xf32>
    %11 = arith.maximumf %9, %10 : vector<8x128xf32>
    %12 = arith.truncf %11 : vector<8x128xf32> to vector<8x128xbf16>
    %c0_9 = arith.constant 0 : index
    %c0_10 = arith.constant 0 : index
    %13 = vector.load %arg2[%c0_9, %c0_10] : memref<8x8xf32, #tpu.memory_space<vmem>>, vector<8x8xf32>
    %14 = arith.truncf %13 : vector<8x8xf32> to vector<8x8xbf16>
    %15 = tpu.concatenate %12, %14 in 1 : vector<8x128xbf16>, vector<8x8xbf16> -> vector<8x136xbf16>
    %c0_11 = arith.constant 0 : index
    %c0_12 = arith.constant 0 : index
    %16 = vector.load %arg4[%c0_11, %c0_12] : memref<136x128xbf16, #tpu.memory_space<vmem>>, vector<136x128xbf16>
    %cst_13 = arith.constant dense<0.000000e+00> : vector<8x128xf32>
    %17 = tpu.matmul %15, %16, %cst_13 {dimension_numbers = #tpu.dot_dimension_numbers<[1], [0], [0], [1], [0, 0, 1, 1], [], []>} : vector<8x136xbf16>, vector<136x128xbf16>, vector<8x128xf32> -> vector<8x128xf32>
    %18 = vector.broadcast %1 : vector<1x128xf32> to vector<8x128xf32>
    %19 = arith.addf %17, %18 : vector<8x128xf32>
    %cst_14 = arith.constant 0.000000e+00 : f32
    %20 = vector.broadcast %cst_14 : f32 to vector<8x128xf32>
    %21 = arith.maximumf %19, %20 : vector<8x128xf32>
    %22 = vector.broadcast %2 : vector<1x128xf32> to vector<8x128xf32>
    %23 = arith.mulf %21, %22 : vector<8x128xf32>
    %cst_15 = arith.constant dense<0.000000e+00> : vector<8xf32>
    %24 = vector.multi_reduction <add>, %23, %cst_15 [1] : vector<8x128xf32> to vector<8xf32>
    %25 = vector.shape_cast %24 : vector<8xf32> to vector<8x1xf32>
    %26 = vector.broadcast %3 : vector<1x1xf32> to vector<8x1xf32>
    %27 = arith.addf %25, %26 : vector<8x1xf32>
    %c0_16 = arith.constant 0 : index
    %c0_17 = arith.constant 0 : index
    %28 = vector.load %arg6[%c0_16, %c0_17] : memref<8x1xf32, #tpu.memory_space<vmem>>, vector<8x1xf32>
    tpu.vector_store %arg6[%c0_16, %c0_17], %27 {strides = array<i32>} : memref<8x1xf32, #tpu.memory_space<vmem>>, vector<8x1xf32>,
    return
  }
  func.func @transform_0(%arg0: i32) -> (i32, i32) {
    %c0_i32 = arith.constant 0 : i32
    %c0_i32_0 = arith.constant 0 : i32
    return %arg0, %c0_i32 : i32, i32
  }
  func.func @transform_1(%arg0: i32) -> (i32, i32) {
    %c0_i32 = arith.constant 0 : i32
    %c0_i32_0 = arith.constant 0 : i32
    return %arg0, %c0_i32 : i32, i32
  }
  func.func @transform_2(%arg0: i32) -> (i32, i32) {
    %c0_i32 = arith.constant 0 : i32
    %c0_i32_0 = arith.constant 0 : i32
    %c0_i32_1 = arith.constant 0 : i32
    return %c0_i32, %c0_i32_0 : i32, i32
  }
  func.func @transform_3(%arg0: i32) -> (i32, i32) {
    %c0_i32 = arith.constant 0 : i32
    %c0_i32_0 = arith.constant 0 : i32
    %c0_i32_1 = arith.constant 0 : i32
    return %c0_i32, %c0_i32_0 : i32, i32
  }
  func.func @transform_4(%arg0: i32) -> (i32, i32) {
    %c0_i32 = arith.constant 0 : i32
    %c0_i32_0 = arith.constant 0 : i32
    %c0_i32_1 = arith.constant 0 : i32
    return %c0_i32, %c0_i32_0 : i32, i32
  }
  func.func @transform_5(%arg0: i32) -> (i32, i32) {
    %c0_i32 = arith.constant 0 : i32
    %c0_i32_0 = arith.constant 0 : i32
    return %arg0, %c0_i32 : i32, i32
  }
}

</mosaic_0001>

<bundles_post_ra>
// kernel: tpu_custom_call.1
= control target key start
LH: loop header
LB: loop body
LE: loop exit
PB: predicated region body
PF: predicated region fallthrough
CT: control target
= control target key end

     0   :  { %10 = vsyncpa [#allocation3], 0  ;;  %s500_s0 = inlined_call_operand.hbm [shape: f32[8,32], index: 0, kind: input, shape index: {}]   ;;  %s501_s1 = inlined_call_operand.hbm [shape: f32[8,8], index: 1, kind: input, shape index: {}]   ;;  %s502_s2 = inlined_call_operand.hbm [shape: bf16[32,128], index: 2, kind: input, shape index: {}]   ;;  %s503_s3 = inlined_call_operand.hbm [shape: bf16[136,128], index: 3, kind: input, shape index: {}]   ;;  %s504_s4 = inlined_call_operand.hbm [shape: f32[8,128], index: 4, kind: input, shape index: {}]   ;;  %s505_s5 = inlined_call_operand.vmem [shape: f32[8,1], index: 5, kind: output, shape index: {}]  }
   0x1   :  { %11 = vsyncpa [#allocation5], 0  ;;  %s29_s20 = sshll.u32 %s501_s1, 4  ;;  %s30_s20 = int_to_ptr.hbm [resolvable:$true] %s29_s20 }
   0x2   :  { %12 = vsyncpa [#allocation8], 0  ;;  %s445_s21 = smov [#allocation4]   ;;  %s52_s25 = sshll.u32 %s503_s3, 4  ;;  %s53_s25 = int_to_ptr.hbm [resolvable:$true] %s52_s25 }
   0x3   :  { %s31_s22 = sshll.u32 %s445_s21, 4  ;;  %s446_s26 = smov [#allocation7]   ;;  %s32_s22 = int_to_ptr.vmem [resolvable:$true] %s31_s22 }
   0x4   :  { %34 = dma.hbm_to_vmem [thread:$0]  %s30_s20, 128, %s32_s22, [#allocation5]  }
   0x5   :  { %s54_s27 = sshll.u32 %s446_s26, 4  ;;  %s18_s30 = sshll.u32 %s500_s0, 4  ;;  %s55_s27 = int_to_ptr.vmem [resolvable:$true] %s54_s27  ;;  %s19_s30 = int_to_ptr.hbm [resolvable:$true] %s18_s30 }
   0x6   :  { %s447_s1 = smov 64   ;;  %s448_s6 = smov 4  }
   0x7   :  { %60 = dma.hbm_to_vmem [thread:$0]  %s53_s25, 1088, %s55_s27, [#allocation8], %s447_s1, %s447_s1, %s448_s6  }
   0x8   :  { %s39_s9 = sshll.u32 %s502_s2, 4  ;;  %s449_s10 = smov [#allocation2]   ;;  %s40_s9 = int_to_ptr.hbm [resolvable:$true] %s39_s9 }
   0x9   :  { %s20_s11 = sshll.u32 %s449_s10, 4  ;;  %s450_s3 = smov [#allocation6]   ;;  %s21_s11 = int_to_ptr.vmem [resolvable:$true] %s20_s11 }
   0xa   :  { %23 = dma.hbm_to_vmem [thread:$0]  %s19_s30, 128, %s21_s11, [#allocation3]  }
   0xb   :  { %s41_s12 = sshll.u32 %s450_s3, 4  ;;  %s66_s0 = sshll.u32 %s504_s4, 4  ;;  %s42_s12 = int_to_ptr.vmem [resolvable:$true] %s41_s12  ;;  %s67_s0 = int_to_ptr.hbm [resolvable:$true] %s66_s0 }
   0xc   :  { %47 = dma.hbm_to_vmem [thread:$0]  %s40_s9, 256, %s42_s12, [#allocation5], %s447_s1, %s447_s1, %s448_s6  }
   0xd   :  { %s451_s15 = smov [#allocation9]  }
   0xe   :  { %s68_s16 = sshll.u32 %s451_s15, 4  ;;  %s69_s16 = int_to_ptr.vmem [resolvable:$true] %s68_s16 }
   0xf   :  { %71 = dma.hbm_to_vmem [thread:$0]  %s67_s0, 128, %s69_s16, [#allocation8]  }
  0x10   :  { %439 = dma.done.wait [#allocation3], 128  }
  0x11   :  { %440 = vsyncadd [#allocation3], 4294967168 }
  0x12   :  { %441 = dma.done.wait [#allocation5], 384  }
  0x13   :  { %442 = vsyncadd [#allocation5], 4294966912 }
  0x14   :  { %443 = dma.done.wait [#allocation8], 1216  }
  0x15   :  { %444 = vsyncadd [#allocation8], 4294966080  ;;  %v299_v0 = vld [vmem:[#allocation6 + $0x8] sm:$0xff]  ;;  %v298_v2 = vld [vmem:[#allocation6] sm:$0xff]  ;;  %vm210_vm0 = vcmask 1043456   ;;  %vm116_vm1 = vcmask 261120  }
  0x16   :  { %v307_v1 = vld [vmem:[#allocation7 + $0x38] sm:$0xff]  ;;  %126 = vmatpush.bf16.msra.mxu0 %v299_v0  ;;  %v97_v3 = vld [vmem:[#allocation2] sm:$0xff]  ;;  %v306_v5 = vld [vmem:[#allocation7 + $0x30] sm:$0xff]  ;;  %vm206_vm2 = vcmask 64512   ;;  %vm247_vm3 = vcmask 7168  }
  0x17   :  { %v153_v4 = vld [vmem:[#allocation7 + $0x40] sm:$0xf]  ;;  %214 = vmatpush.bf16.msra.mxu1 %v307_v1  ;;  %v135_v7 = vld [vmem:[#allocation4] sm:$0xff]  ;;  %v98_v8 = vpack.c.bf16 %v97_v3, %v97_v3  ;;  %v303_v14 = vld [vmem:[#allocation7 + $0x18] sm:$0xff] }
  0x18   :  { %v188_v6 = vunpack.c.l.b16 %v153_v4  ;;  %v305_v10 = vld [vmem:[#allocation7 + $0x28] sm:$0xff]  ;;  %v136_v12 = vpack.c.bf16 %v135_v7, %v135_v7  ;;  %v304_v13 = vld [vmem:[#allocation7 + $0x20] sm:$0xff]  ;;  %v302_v15 = vld [vmem:[#allocation7 + $0x10] sm:$0xff] }
  0x19   :  { %v301_v16 = vld [vmem:[#allocation7 + $0x8] sm:$0xff]  ;;  %v300_v17 = vld [vmem:[#allocation7] sm:$0xff] }
  0x1a   :  { %v197_v9 = vpack.c.b16 %v188_v6, %v188_v6  ;;  %127 = vmatpush.bf16.msra.mxu0 %v298_v2  ;;  %v315_v18 = vld [vmem:[#allocation9] ss:$0 sm:$0xff]  ;;  %v316_v26 = vld [vmem:[#allocation9 + $0x1] ss:$0 sm:$0xff]  ;;  %v317_v30 = vld [vmem:[#allocation9 + $0x2] ss:$0 sm:$0xff] }
  0x1b   :  { %215 = vmatpush.bf16.msra.mxu1 %v306_v5  ;;  %v318_v34 = vld [vmem:[#allocation9 + $0x3] ss:$0 sm:$0xff] }
  0x1c   :  { %v212_v11 = vsel %vm210_vm0, %v197_v9, 0 }
  0x1d   :  { %234 = vmatpush.bf16.msra.mxu2 %v212_v11  ;;  %264 = vmatmul.msk.bf16.vlgmr.msra.gmra.mxu0 %vm116_vm1, %v98_v8 }
  0x1f   :  { %216 = vmatpush.bf16.msra.mxu1 %v305_v10 }
  0x20   :  { %297 = vmatmul.msk.bf16.vlgmr.msra.gmra.mxu2 %vm206_vm2, %v136_v12 }
  0x23   :  { %217 = vmatpush.bf16.msra.mxu1 %v304_v13 }
  0x27   :  { %218 = vmatpush.bf16.msra.mxu1 %v303_v14 }
  0x2b   :  { %219 = vmatpush.bf16.msra.mxu1 %v302_v15 }
  0x2f   :  { %220 = vmatpush.bf16.msra.mxu1 %v301_v16 }
  0x33   :  { %221 = vmatpush.bf16.msra.mxu1 %v300_v17 }
  0x9a   :  { %v129_v19 = vpop.f32.mrf.mxu0 }
  0x9b   :  { %v130_v20 = vadd.f32 %v315_v18, %v129_v19 }
  0x9d   :  { %v133_v21 = vmax.f32 %v130_v20, 0.0 }
  0x9f   :  { %v134_v22 = vpack.c.bf16 %v133_v21, %v133_v21 }
  0xa1   :  { %222 = vmatmul.bf16.vlgmr.msra.gmra.mxu1 %v134_v22 }
  0xa2   :  { %v131_v23 = vpop.f32.mrf.mxu0 }
  0xa3   :  { %v236_v24 = vpop.f32.mrf.mxu2 }
  0xab   :  { %v238_v25 = vpop.f32.mrf.mxu2 }
 0x11e   :  { %v223_v27 = vpop.f32.mrf.mxu1 }
 0x11f   :  { %v224_v28 = vadd.f32 %v316_v26, %v223_v27 }
 0x121   :  { %v237_v29 = vadd.f32 %v236_v24, %v224_v28 }
 0x123   :  { %v240_v31 = vmax.f32 %v237_v29, 0.0 }
 0x125   :  { %v242_v32 = vmul.f32 %v317_v30, %v240_v31 }
 0x126   :  { %v225_v33 = vpop.f32.mrf.mxu1 }
 0x127   :  { %243 = vadd.xlane.f32.xlu0 %v242_v32 }
 0x19a   :  { %v244_v35 = vpop.xlane.xlu0 %243 }
 0x19b   :  { %v246_v36 = vadd.f32 %v318_v34, %v244_v35 }
 0x19d   :  { %248 = vst.msk [vmem:[%s505_s5] sm:$0xff] %vm247_vm3, %v246_v36 }
 0x19e   :  { %253 = vsyncpa [#allocation3], 1 }
 0x19f   :  { %254 = vsyncpa [#allocation5], 1 }
 0x1a0   :  { %255 = vsyncpa [#allocation8], 1 }

</bundles_post_ra>
